<compile_context>
chip_gen: v5e
topology: v5e:2x2
jax: 0.10.0
libtpu: 0.0.40
codegen_flags: <defaults>
</compile_context>

<pallas_src>
import functools

import jax
import jax.numpy as jnp
from jax.experimental import pallas as pl
from jax.experimental.pallas import tpu as pltpu

CROP = 101


def _outconv_kernel(x_ref, w_ref, b_ref, o_ref, *, crop_start, apply_sigmoid,
                    lane_chunk):
    # x_ref: (C, H, TW) VMEM   w_ref: (O, C) SMEM   b_ref: (O,) SMEM
    # o_ref: (O, CROP, TW) VMEM
    c_in = x_ref.shape[0]
    o_ch = o_ref.shape[0]
    n_rows = o_ref.shape[1]                       # 101 (cropped H rows)
    tw = x_ref.shape[-1]
    n_lane_chunks = tw // lane_chunk              # static, small (1 for W=128)

    for j in range(n_lane_chunks):                # static unrolled lane loop
        lo = j * lane_chunk
        hi = lo + lane_chunk
        for o in range(o_ch):                     # O is tiny (typically 1)
            # Bias splat from an SMEM scalar: sreg -> vreg splat, effectively free.
            acc = jnp.full((n_rows, lane_chunk), b_ref[o], dtype=jnp.float32)
            # 1x1 conv == per-pixel channel mix.  C/O are tiny, so keep it on the
            # VPU with SMEM scalar weights.  (Only once BOTH C and O reach ~32
            # would an MXU jnp.dot path pay off -- not the case for this module.)
            for c in range(c_in):
                xc = x_ref[c, crop_start:crop_start + n_rows, lo:hi]
                acc = acc + w_ref[o, c] * xc.astype(jnp.float32)
            if apply_sigmoid:
                # sigmoid = 1 / (1 + exp(-x)); exp + reciprocal both run on the
                # EUP slot.  approx=False keeps full f32 accuracy (approx=True
                # would trade ~2^-12 error for a few cycles if EUP ever binds).
                acc = pl.reciprocal(1.0 + jnp.exp(-acc), approx=False)
            o_ref[o, :, lo:hi] = acc.astype(o_ref.dtype)


def _pick_lane_tile(w, c, h, target_bytes):
    """Largest multiple-of-128 lane tile dividing W whose (C, H, TW) f32 input
    block stays under target_bytes (full W when W is not a multiple of 128)."""
    if w % 128 != 0:
        return w
    max_tw = max(128, (target_bytes // (4 * max(c * h, 1))) // 128 * 128)
    tw = min(w, max_tw)
    while w % tw != 0:
        tw -= 128
    return tw


def outconv_forward(x, w, b, logits=False):
    """Pallas port of outconv.forward.
    x: (N, C, H, W) f32; w: (O, C, 1, 1) 1x1-conv weight; b: (O,) bias."""
    N, C, H, W = x.shape
    O = w.shape[0]

    # The module derives the crop from x.shape[-1] and applies it to both axes.
    crop_start = (W - CROP) // 2
    crop_end = crop_start + CROP
    assert H >= crop_end and W >= crop_end, "input too small for the 101x101 crop"

    w2 = w.reshape(O, C).astype(jnp.float32)      # SMEM-resident scalar table
    b1 = b.reshape(O).astype(jnp.float32)

    tw = _pick_lane_tile(W, C, H, target_bytes=8 << 20)
    lane_chunk = 128 if tw % 128 == 0 else tw
    grid = (N, W // tw)                            # both axes "parallel"

    in_block = C * H * tw * 4
    out_block = O * CROP * tw * 4
    # 2x double-buffered in/out blocks + headroom, capped per-generation
    # (v7x has only 64 MiB of VMEM per TensorCore).
    try:
        vmem_cap = int(0.75 * pltpu.get_tpu_info().vmem_capacity_bytes)
    except Exception:  # pragma: no cover - conservative fallback
        vmem_cap = 48 << 20
    vmem_limit = int(min(vmem_cap,
                         max(16 << 20, 2 * (in_block + out_block) + (2 << 20))))

    cost = pl.CostEstimate(
        flops=2 * N * C * O * CROP * W,
        transcendentals=0 if logits else N * O * CROP * W,
        bytes_accessed=4 * (N * C * H * W + N * O * CROP * W + O * C + O),
    )

    kernel = functools.partial(
        _outconv_kernel,
        crop_start=crop_start,
        apply_sigmoid=not logits,
        lane_chunk=lane_chunk,
    )

    y = pl.pallas_call(
        kernel,
        out_shape=jax.ShapeDtypeStruct((N, O, CROP, W), x.dtype),
        grid_spec=pltpu.PrefetchScalarGridSpec(
            num_scalar_prefetch=0,
            grid=grid,
            in_specs=[
                pl.BlockSpec((None, C, H, tw), lambda n, wj: (n, 0, 0, wj)),
                pl.BlockSpec(memory_space=pltpu.MemorySpace.SMEM),  # weight (O, C)
                pl.BlockSpec(memory_space=pltpu.MemorySpace.SMEM),  # bias   (O,)
            ],
            out_specs=pl.BlockSpec((None, O, CROP, tw),
                                   lambda n, wj: (n, 0, 0, wj)),
        ),
        compiler_params=pltpu.CompilerParams(
            dimension_semantics=("parallel", "parallel"),
            vmem_limit_bytes=vmem_limit,
        ),
        cost_estimate=cost,
    )(x, w2, b1)

    # W-crop (101 lanes would force masked stores in-kernel) + squeeze, in JAX.
    y = y[:, :, :, crop_start:crop_end]
    return jnp.squeeze(y)


def reference(x, w, b, logits=False):
    O, C = w.shape[0], w.shape[1]
    w2 = w.reshape(O, C)
    y = jnp.einsum('nchw,oc->nohw', x, w2) + b[None, :, None, None]
    if not logits:
        y = jax.nn.sigmoid(y)
    cs = (x.shape[-1] - CROP) // 2
    ce = cs + CROP
    return jnp.squeeze(y[:, :, cs:ce, cs:ce])


if __name__ == "__main__":
    # Shapes consistent with the module: the forward crops to 101x101 and the
    # (unused) conv_mask has kernel 128, so spatial = 128. Small N / channels.
    N, C_in, C_out, H, W = 2, 4, 1, 128, 128

    key = jax.random.PRNGKey(0)
    kx, kw, kb = jax.random.split(key, 3)

    x = jax.random.normal(kx, (N, C_in, H, W), dtype=jnp.float32)
    w = jax.random.normal(kw, (C_out, C_in, 1, 1), dtype=jnp.float32) * 0.3
    b = jax.random.normal(kb, (C_out,), dtype=jnp.float32) * 0.1

    out = outconv_forward(x, w, b, logits=False)
    out = jax.block_until_ready(out)

    ref = reference(x, w, b, logits=False)
    assert out.shape == ref.shape == (N, CROP, CROP), (out.shape, ref.shape)
    assert jnp.allclose(out, ref, atol=1e-5, rtol=1e-5), "mismatch vs reference"

    print("KERNEL_OK")
</pallas_src>

<mosaic_0001>
module attributes {stable_mosaic.version = 11 : i64} {
  func.func @_outconv_kernel(%arg0: i32, %arg1: i32, %arg2: memref<1x4x128x128xf32, #tpu.memory_space<vmem>>, %arg3: memref<1x4xf32, #tpu.memory_space<smem>>, %arg4: memref<1xf32, #tpu.memory_space<smem>>, %arg5: memref<1x1x101x128xf32, #tpu.memory_space<vmem>>) attributes {dimension_semantics = [#tpu.dimension_semantics<parallel>, #tpu.dimension_semantics<parallel>], iteration_bounds = array<i64: 2, 1>, scalar_prefetch = 0 : i64, scratch_operands = 0 : i64, tpu.core_type = #tpu.core_type<tc>, window_params = [{transform_indices = @transform_0, window_bounds = array<i64: 1, 4, 128, 128>}, {transform_indices = @transform_1, window_bounds = array<i64: 1, 4>}, {transform_indices = @transform_2, window_bounds = array<i64: 1>}, {transform_indices = @transform_3, window_bounds = array<i64: 1, 1, 101, 128>}]} {
    %c0 = arith.constant 0 : index
    %0 = memref.load %arg4[%c0] : memref<1xf32, #tpu.memory_space<smem>>
    %1 = vector.broadcast %0 : f32 to vector<101x128xf32>
    %c0_0 = arith.constant 0 : index
    %c0_1 = arith.constant 0 : index
    %c13 = arith.constant 13 : index
    %c0_2 = arith.constant 0 : index
    %2 = vector.load %arg2[%c0_0, %c0_1, %c13, %c0_2] : memref<1x4x128x128xf32, #tpu.memory_space<vmem>>, vector<1x1x101x128xf32>
    %3 = vector.shape_cast %2 : vector<1x1x101x128xf32> to vector<101x128xf32>
    %c0_3 = arith.constant 0 : index
    %c0_4 = arith.constant 0 : index
    %4 = memref.load %arg3[%c0_3, %c0_4] : memref<1x4xf32, #tpu.memory_space<smem>>
    %5 = vector.broadcast %4 : f32 to vector<101x128xf32>
    %6 = arith.mulf %5, %3 : vector<101x128xf32>
    %7 = arith.addf %1, %6 : vector<101x128xf32>
    %c0_5 = arith.constant 0 : index
    %c1 = arith.constant 1 : index
    %c13_6 = arith.constant 13 : index
    %c0_7 = arith.constant 0 : index
    %8 = vector.load %arg2[%c0_5, %c1, %c13_6, %c0_7] : memref<1x4x128x128xf32, #tpu.memory_space<vmem>>, vector<1x1x101x128xf32>
    %9 = vector.shape_cast %8 : vector<1x1x101x128xf32> to vector<101x128xf32>
    %c0_8 = arith.constant 0 : index
    %c1_9 = arith.constant 1 : index
    %10 = memref.load %arg3[%c0_8, %c1_9] : memref<1x4xf32, #tpu.memory_space<smem>>
    %11 = vector.broadcast %10 : f32 to vector<101x128xf32>
    %12 = arith.mulf %11, %9 : vector<101x128xf32>
    %13 = arith.addf %7, %12 : vector<101x128xf32>
    %c0_10 = arith.constant 0 : index
    %c2 = arith.constant 2 : index
    %c13_11 = arith.constant 13 : index
    %c0_12 = arith.constant 0 : index
    %14 = vector.load %arg2[%c0_10, %c2, %c13_11, %c0_12] : memref<1x4x128x128xf32, #tpu.memory_space<vmem>>, vector<1x1x101x128xf32>
    %15 = vector.shape_cast %14 : vector<1x1x101x128xf32> to vector<101x128xf32>
    %c0_13 = arith.constant 0 : index
    %c2_14 = arith.constant 2 : index
    %16 = memref.load %arg3[%c0_13, %c2_14] : memref<1x4xf32, #tpu.memory_space<smem>>
    %17 = vector.broadcast %16 : f32 to vector<101x128xf32>
    %18 = arith.mulf %17, %15 : vector<101x128xf32>
    %19 = arith.addf %13, %18 : vector<101x128xf32>
    %c0_15 = arith.constant 0 : index
    %c3 = arith.constant 3 : index
    %c13_16 = arith.constant 13 : index
    %c0_17 = arith.constant 0 : index
    %20 = vector.load %arg2[%c0_15, %c3, %c13_16, %c0_17] : memref<1x4x128x128xf32, #tpu.memory_space<vmem>>, vector<1x1x101x128xf32>
    %21 = vector.shape_cast %20 : vector<1x1x101x128xf32> to vector<101x128xf32>
    %c0_18 = arith.constant 0 : index
    %c3_19 = arith.constant 3 : index
    %22 = memref.load %arg3[%c0_18, %c3_19] : memref<1x4xf32, #tpu.memory_space<smem>>
    %23 = vector.broadcast %22 : f32 to vector<101x128xf32>
    %24 = arith.mulf %23, %21 : vector<101x128xf32>
    %25 = arith.addf %19, %24 : vector<101x128xf32>
    %cst = arith.constant 0.000000e+00 : f32
    %26 = vector.broadcast %cst : f32 to vector<101x128xf32>
    %27 = arith.subf %26, %25 : vector<101x128xf32>
    %28 = math.exp %27 : vector<101x128xf32>
    %cst_20 = arith.constant 1.000000e+00 : f32
    %29 = vector.broadcast %cst_20 : f32 to vector<101x128xf32>
    %30 = arith.addf %29, %28 : vector<101x128xf32>
    %31 = tpu.reciprocal %30 : vector<101x128xf32> -> vector<101x128xf32>
    %c0_21 = arith.constant 0 : index
    %c0_22 = arith.constant 0 : index
    %c0_23 = arith.constant 0 : index
    %c0_24 = arith.constant 0 : index
    %32 = vector.load %arg5[%c0_21, %c0_22, %c0_23, %c0_24] : memref<1x1x101x128xf32, #tpu.memory_space<vmem>>, vector<1x1x101x128xf32>
    %33 = vector.shape_cast %32 : vector<1x1x101x128xf32> to vector<101x128xf32>
    %34 = vector.shape_cast %31 : vector<101x128xf32> to vector<1x1x101x128xf32>
    tpu.vector_store %arg5[%c0_21, %c0_22, %c0_23, %c0_24], %34 {strides = array<i32>} : memref<1x1x101x128xf32, #tpu.memory_space<vmem>>, vector<1x1x101x128xf32>,
    return
  }
  func.func @transform_0(%arg0: i32, %arg1: i32) -> (i32, i32, i32, i32) {
    %c0_i32 = arith.constant 0 : i32
    %c0_i32_0 = arith.constant 0 : i32
    %c0_i32_1 = arith.constant 0 : i32
    return %arg0, %c0_i32, %c0_i32_0, %arg1 : i32, i32, i32, i32
  }
  func.func @transform_1(%arg0: i32, %arg1: i32) -> (i32, i32) {
    %c0_i32 = arith.constant 0 : i32
    %c0_i32_0 = arith.constant 0 : i32
    %c0_i32_1 = arith.constant 0 : i32
    return %c0_i32, %c0_i32_0 : i32, i32
  }
  func.func @transform_2(%arg0: i32, %arg1: i32) -> i32 {
    %c0_i32 = arith.constant 0 : i32
    %c0_i32_0 = arith.constant 0 : i32
    return %c0_i32 : i32
  }
  func.func @transform_3(%arg0: i32, %arg1: i32) -> (i32, i32, i32, i32) {
    %c0_i32 = arith.constant 0 : i32
    %c0_i32_0 = arith.constant 0 : i32
    %c0_i32_1 = arith.constant 0 : i32
    return %arg0, %c0_i32, %c0_i32_0, %arg1 : i32, i32, i32, i32
  }
}

</mosaic_0001>

<bundles_post_ra>
// kernel: tpu_custom_call.1
= control target key start
LH: loop header
LB: loop body
LE: loop exit
PB: predicated region body
PF: predicated region fallthrough
CT: control target
= control target key end

     0   :  { %s1514_s0 = inlined_call_operand.hbm [shape: f32[2,4,128,128], index: 0, kind: input, shape index: {}]   ;;  %s1515_s1 = inlined_call_operand.vmem [shape: f32[1,4], index: 1, kind: input, shape index: {}]   ;;  %s1516_s2 = inlined_call_operand.<no memory space> [shape: f32[1], index: 2, kind: input, shape index: {}]   ;;  %s1517_s3 = inlined_call_operand.vmem [shape: f32[2,1,101,128], index: 3, kind: output, shape index: {}]  }
   0x1   :  { %8 = sst [smem:[#allocation2]] %s1516_s2 }
   0x2   :  { %9 = vsyncpa [#allocation4], 0 }
   0x3   :  { %11 = vsyncpa [#allocation4 + $0x1], 0 }
   0x4   :  { %12 = vsyncpa [#allocation5], 0  ;;  %s1055_s14 = smov 0   ;;  %s1057_s15 = smov 0  }
   0x5   :  { %s1059_s16 = smov 0   ;;  %s1061_s17 = smov 0  }
   0x6   :  { %s1063_s18 = smov 0   ;;  %s1065_s19 = smov 0  }
   0x7 LB: > { %s750_s2 = sadd.s32 4294967295, %s1027_s19   ;;  %s39_s20 = sadd.s32 1, %s1015_s16  ;;  %s1027_s19 = sphi %s1065_s19, %s18_s19   ;;  %s1023_s18 = sphi %s1063_s18, %s1557_s18   ;;  %s1019_s17 = sphi %s1061_s17, %s1556_s17   ;;  %s1015_s16 = sphi %s1059_s16, %s1555_s16   ;;  %s1011_s15 = sphi %s1057_s15, %s1554_s15   ;;  %s1007_s14 = sphi %s1055_s14, %s1553_s14  }
   0x8   : > { %p46_p0 = scmp.ne.s32.totalorder %s1015_s16, %s1011_s15  ;;  %p47_p1 = scmp.eq.s32.totalorder %s1027_s19, 0 }
   0x9   : > { %p52_p2 = scmp.ne.s32.totalorder %s1011_s15, %s1007_s14  ;;  %p1089_p3 = scmp.eq.s32.totalorder %s750_s2, 0 }
   0xa   : > { %p48_p4 = por %p47_p1, %p46_p0  ;;  %p752_p5 = scmp.ge.s32.totalorder %s1027_s19, 1 }
   0xb   : > { %p1096_p6 = por %p1089_p3, %p52_p2  ;;  %p133_p7 = scmp.lt.s32.totalorder %s1027_s19, 3 }
   0xc   : > { %s145_s25 = sshll.u32 %s1515_s1, 4  ;;  %p823_p10 = scmp.lt.s32.totalorder %s1027_s19, 2  ;;  %s146_s25 = int_to_ptr.vmem [resolvable:$true] %s145_s25 }
   0xd   : > { %p1104_p8 = pnand %p752_p5, %p133_p7  ;;  %s159_s27 = sand.u32 1, %s1015_s16  }
   0xe   : > { %p1114_p12 = pnand %p823_p10, %p48_p4  ;;  %s1029_s29 = smov [#allocation6]  }
   0xf   : > { %p814_p9 = pneg %p1104_p8  ;;  %s30_s30 = sadd.s32 1, %s1023_s18 }
  0x10   : > { %s755_s4 = sshll.u32 %s159_s27, 9  ;;  %p32_p13 = scmp.ge.s32.totalorder %s30_s30, 2 }
  0x11   : > { %p815_p11 = pnand %p814_p9, %p1089_p3  ;;  %s806_s5 = sshll.u32 %s1023_s18, 9 }
  0x12   : > { %s163_s6 = scalar_lea.vmem [#allocation3], %s755_s4  ;;  %s1559_s30 = smov (%p32_p13, %s30_s30), 0 }
  0x13   : > { %817 = dma.vmem_to_smem (!%p815_p11), %s146_s25, 16, %s1029_s29, [#allocation5]  }
  0x14   : > { %s172_s7 = sshll.u32 %s163_s6, 4  ;;  %s169_s10 = scalar_lea.hbm %s1514_s0, %s806_s5  ;;  %s173_s7 = int_to_ptr.vmem [resolvable:$true] %s172_s7 }
  0x15   : > { %s34_s11 = ssub.s32 %s1023_s18, %s1559_s30  ;;  %s170_s12 = sshll.u32 %s169_s10, 4  ;;  %s171_s12 = int_to_ptr.hbm [resolvable:$true] %s170_s12 }
  0x16   : > { %p37_p0 = scmp.eq.s32.totalorder %s34_s11, 0  ;;  %s160_s14 = scalar_lea.sflag [#allocation4], %s159_s27 }
  0x17   : > { %s1030_s2 = smov 128   ;;  %s1031_s23 = smov 8  }
  0x18   : > { %s1130_s13 = scalar_select %p37_p0, %s1015_s16, %s39_s20  }
  0x19   : > { %821 = dma.hbm_to_vmem [thread:$0]  (!%p1114_p12), %s171_s12, 8192, %s173_s7, %s160_s14, %s1030_s2, %s1030_s2, %s1031_s23  }
  0x1a   : > { %184 = sbr.rel (%p1104_p8) target bundleno = 143 (0x8f), region = 32  ;;  %s186_s24 = sand.u32 (!%p1104_p8), 1, %s1011_s15  }
  0x1b   : > { %s759_s25 = sshll.u32 (!%p1104_p8), %s186_s24, 9  ;;  %s187_s29 = scalar_lea.sflag (!%p1104_p8), [#allocation4], %s186_s24 }
  0x1c   : > { %s1137_s4 = scalar_lea.vmem (!%p1104_p8), [#allocation3], %s759_s25 }
  0x1f   : > { %998 = dma.done.wait (%p1096_p6), %s187_s29, 8192  }
  0x20   : > { %1000 = vsyncadd (%p1096_p6), %s187_s29, 4294959104 }
  0x21   : > { %1002 = dma.done.wait (%p1089_p3), [#allocation5], 16  }
  0x22   : > { %1004 = vsyncadd (%p1089_p3), [#allocation5], 4294967280 }
  0x23   : > { %201 = sfence }
  0x24   : > { %s231_s20 = sld [smem:[#allocation2]]  ;;  %v233_v0 = vld [vmem:[%s1137_s4 + $0xd] sm:$0xff]  ;;  %v234_v1 = vld [vmem:[%s1137_s4 + $0x15] sm:$0xff]  ;;  %v235_v2 = vld [vmem:[%s1137_s4 + $0x1d] sm:$0xff]  ;;  %p223_p1 = scmp.lt.s32.totalorder %s1019_s17, 1 }
  0x25   : > { %s246_s26 = sld [smem:[#allocation6]]  ;;  %v236_v3 = vld [vmem:[%s1137_s4 + $0x25] sm:$0xff]  ;;  %v237_v4 = vld [vmem:[%s1137_s4 + $0x2d] sm:$0xff]  ;;  %v238_v5 = vld [vmem:[%s1137_s4 + $0x35] sm:$0xff] }
  0x26   : > { %s775_s22 = sld [smem:[#allocation6 + $0x1]]  ;;  %v762_v8 = vld [vmem:[%s1137_s4 + $0x8d] sm:$0xff]  ;;  %v763_v12 = vld [vmem:[%s1137_s4 + $0x95] sm:$0xff]  ;;  %v239_v16 = vld [vmem:[%s1137_s4 + $0x3d] sm:$0xff]  ;;  %s1561_s17 = smov (!%p223_p1, %s1019_s17), 1 }
  0x27   : > { %s789_s27 = sld [smem:[#allocation6 + $0x2]]  ;;  %v776_v9 = vld [vmem:[%s1137_s4 + $0x10d] sm:$0xff]  ;;  %v777_v13 = vld [vmem:[%s1137_s4 + $0x115] sm:$0xff]  ;;  %v764_v27 = vld [vmem:[%s1137_s4 + $0x9d] sm:$0xff]  ;;  %s807_s21 = smul.u32 104, %s1561_s17 }
  0x28   : > { %s1148_s28 = sld [smem:[#allocation6 + $0x3]]  ;;  %v790_v18 = vld [vmem:[%s1137_s4 + $0x18d] sm:$0xff]  ;;  %v791_v19 = vld [vmem:[%s1137_s4 + $0x195] sm:$0xff]  ;;  %v778_v28 = vld [vmem:[%s1137_s4 + $0x11d] sm:$0xff] }
  0x29   : > { %v792_v29 = vld [vmem:[%s1137_s4 + $0x19d] sm:$0xff]  ;;  %v765_v34 = vld [vmem:[%s1137_s4 + $0xa5] sm:$0xff]  ;;  %v766_v45 = vld [vmem:[%s1137_s4 + $0xad] sm:$0xff]  ;;  %s1349_s6 = scalar_lea.vmem %s1517_s3, %s807_s21 }
  0x2a   : > { %v1155_v6 = vstv %s231_s20  ;;  %v779_v35 = vld [vmem:[%s1137_s4 + $0x125] sm:$0xff]  ;;  %v780_v46 = vld [vmem:[%s1137_s4 + $0x12d] sm:$0xff]  ;;  %v767_v56 = vld [vmem:[%s1137_s4 + $0xb5] sm:$0xff] }
  0x2b   : > { %v1157_v7 = vstv %s246_s26  ;;  %v793_v40 = vld [vmem:[%s1137_s4 + $0x1a5] sm:$0xff]  ;;  %v794_v51 = vld [vmem:[%s1137_s4 + $0x1ad] sm:$0xff]  ;;  %v781_v61 = vld [vmem:[%s1137_s4 + $0x135] sm:$0xff] }
  0x2c   : > { %v248_v10 = vmul.f32 %v1157_v7, %v233_v0  ;;  %v249_v11 = vmul.f32 %v1157_v7, %v234_v1  ;;  %v250_v14 = vmul.f32 %v1157_v7, %v235_v2  ;;  %v251_v15 = vmul.f32 %v1157_v7, %v236_v3  ;;  %v795_v62 = vld [vmem:[%s1137_s4 + $0x1b5] sm:$0xff] }
  0x2d   : > { %v1168_v17 = vstv %s775_s22  ;;  %v252_v20 = vmul.f32 %v1157_v7, %v237_v4  ;;  %v253_v21 = vmul.f32 %v1157_v7, %v238_v5  ;;  %v254_v22 = vmul.f32 %v1157_v7, %v239_v16 }
  0x2e   : > { %v261_v23 = vadd.f32 %v248_v10, %v1155_v6  ;;  %v290_v24 = vmul.f32 %v762_v8, %v1168_v17  ;;  %v1177_v25 = vstv %s789_s27  ;;  %v262_v26 = vadd.f32 %v249_v11, %v1155_v6 }
  0x2f   : > { %v332_v30 = vmul.f32 %v776_v9, %v1177_v25  ;;  %v1185_v31 = vstv %s1148_s28  ;;  %v291_v32 = vmul.f32 %v763_v12, %v1168_v17  ;;  %v333_v33 = vmul.f32 %v777_v13, %v1177_v25  ;;  %v768_v9 = vld [vmem:[%s1137_s4 + $0xbd] sm:$0xff] }
  0x30   : > { %v303_v36 = vadd.f32 %v290_v24, %v261_v23  ;;  %v374_v37 = vmul.f32 %v790_v18, %v1185_v31  ;;  %v375_v38 = vmul.f32 %v791_v19, %v1185_v31  ;;  %v263_v39 = vadd.f32 %v250_v14, %v1155_v6  ;;  %v782_v19 = vld [vmem:[%s1137_s4 + $0x13d] sm:$0xff] }
  0x31   : > { %v304_v41 = vadd.f32 %v291_v32, %v262_v26  ;;  %v292_v42 = vmul.f32 %v764_v27, %v1168_v17  ;;  %v334_v43 = vmul.f32 %v778_v28, %v1177_v25  ;;  %v376_v44 = vmul.f32 %v792_v29, %v1185_v31  ;;  %v796_v26 = vld [vmem:[%s1137_s4 + $0x1bd] sm:$0xff] }
  0x32   : > { %v345_v47 = vadd.f32 %v332_v30, %v303_v36  ;;  %v264_v48 = vadd.f32 %v251_v15, %v1155_v6  ;;  %v293_v49 = vmul.f32 %v765_v34, %v1168_v17  ;;  %v335_v50 = vmul.f32 %v779_v35, %v1177_v25  ;;  %v240_v30 = vld [vmem:[%s1137_s4 + $0x45] sm:$0xff] }
  0x33   : > { %v346_v52 = vadd.f32 %v333_v33, %v304_v41  ;;  %v305_v53 = vadd.f32 %v292_v42, %v263_v39  ;;  %v377_v54 = vmul.f32 %v793_v40, %v1185_v31  ;;  %v265_v55 = vadd.f32 %v252_v20, %v1155_v6  ;;  %v769_v40 = vld [vmem:[%s1137_s4 + $0xc5] sm:$0xff] }
  0x34   : > { %v387_v57 = vadd.f32 %v374_v37, %v345_v47  ;;  %v306_v58 = vadd.f32 %v293_v49, %v264_v48  ;;  %v294_v59 = vmul.f32 %v766_v45, %v1168_v17  ;;  %v336_v60 = vmul.f32 %v780_v46, %v1177_v25  ;;  %v797_v46 = vld [vmem:[%s1137_s4 + $0x1c5] sm:$0xff]  ;;  %v770_v47 = vld [vmem:[%s1137_s4 + $0xcd] sm:$0xff] }
  0x35   : > { %v388_v63 = vadd.f32 %v375_v38, %v346_v52  ;;  %v347_v0 = vadd.f32 %v334_v43, %v305_v53  ;;  %v378_v1 = vmul.f32 %v794_v51, %v1185_v31  ;;  %v266_v2 = vadd.f32 %v253_v21, %v1155_v6  ;;  %v783_v43 = vld [vmem:[%s1137_s4 + $0x145] sm:$0xff]  ;;  %v784_v52 = vld [vmem:[%s1137_s4 + $0x14d] sm:$0xff] }
  0x36   : > { %v400_v3 = vsub.f32 0.0, %v387_v57  ;;  %v348_v4 = vadd.f32 %v335_v50, %v306_v58  ;;  %v307_v5 = vadd.f32 %v294_v59, %v265_v55  ;;  %v295_v8 = vmul.f32 %v767_v56, %v1168_v17 }
  0x37   : > { %v401_v10 = vsub.f32 0.0, %v388_v63  ;;  %v389_v11 = vadd.f32 %v376_v44, %v347_v0  ;;  %v337_v12 = vmul.f32 %v781_v61, %v1177_v25  ;;  %v379_v13 = vmul.f32 %v795_v62, %v1185_v31  ;;  %v241_v44 = vld [vmem:[%s1137_s4 + $0x4d] sm:$0xff] }
  0x38   : > { %v413_v14 = vmul.f32 1.442695, %v400_v3  ;;  %v390_v15 = vadd.f32 %v377_v54, %v348_v4  ;;  %v349_v16 = vadd.f32 %v336_v60, %v307_v5  ;;  %v308_v18 = vadd.f32 %v295_v8, %v266_v2  ;;  %v798_v0 = vld [vmem:[%s1137_s4 + $0x1cd] sm:$0xff] }
  0x39   : > { %v415_v20 = vmul.f32 1.442695, %v401_v10  ;;  %v402_v21 = vsub.f32 0.0, %v389_v11  ;;  %v267_v23 = vadd.f32 %v254_v22, %v1155_v6  ;;  %v296_v24 = vmul.f32 %v768_v9, %v1168_v17 }
  0x3a   : > { %876 = vpow2.f32 %v413_v14  ;;  %v403_v27 = vsub.f32 0.0, %v390_v15  ;;  %v391_v28 = vadd.f32 %v378_v1, %v349_v16  ;;  %v350_v29 = vadd.f32 %v337_v12, %v308_v18  ;;  %v242_v1 = vld [vmem:[%s1137_s4 + $0x55] sm:$0xff] }
  0x3b   : > { %878 = vpow2.f32 %v415_v20  ;;  %v417_v32 = vmul.f32 1.442695, %v402_v21  ;;  %v309_v33 = vadd.f32 %v296_v24, %v267_v23  ;;  %v338_v34 = vmul.f32 %v782_v19, %v1177_v25 }
  0x3c   : > { %v419_v35 = vmul.f32 1.442695, %v403_v27  ;;  %v404_v22 = vsub.f32 0.0, %v391_v28  ;;  %v392_v36 = vadd.f32 %v379_v13, %v350_v29  ;;  %v380_v37 = vmul.f32 %v796_v26, %v1185_v31 }
  0x3d   : > { %880 = vpow2.f32 %v417_v32  ;;  %v351_v38 = vadd.f32 %v338_v34, %v309_v33  ;;  %v255_v39 = vmul.f32 %v1157_v7, %v240_v30  ;;  %v297_v51 = vmul.f32 %v769_v40, %v1168_v17 }
  0x3e   : > { %882 = vpow2.f32 %v419_v35  ;;  %v421_v41 = vmul.f32 1.442695, %v404_v22  ;;  %v405_v42 = vsub.f32 0.0, %v392_v36  ;;  %v339_v55 = vmul.f32 %v783_v43, %v1177_v25 }
  0x3f   : > { %v393_v45 = vadd.f32 %v380_v37, %v351_v38  ;;  %v268_v50 = vadd.f32 %v255_v39, %v1155_v6  ;;  %v256_v56 = vmul.f32 %v1157_v7, %v241_v44  ;;  %v1240_v58 = vmul.f32 %v797_v46, %v1185_v31 }
  0x40   : > { %v877_v48 = vpop.eup %876  ;;  %884 = vpow2.f32 %v421_v41  ;;  %v423_v49 = vmul.f32 1.442695, %v405_v42  ;;  %v1243_v59 = vmul.f32 %v770_v47, %v1168_v17  ;;  %v1248_v63 = vmul.f32 %v784_v52, %v1177_v25 }
  0x41   : > { %v879_v53 = vpop.eup %878  ;;  %v1233_v54 = vadd.f32 1.0, %v877_v48  ;;  %v406_v62 = vsub.f32 0.0, %v393_v45  ;;  %v310_v5 = vadd.f32 %v297_v51, %v268_v50  ;;  %v1262_v11 = vadd.f32 %v256_v56, %v1155_v6 }
  0x42   : > { %v1237_v57 = vadd.f32 1.0, %v879_v53  ;;  %886 = vpow2.f32 %v423_v49  ;;  %v1267_v13 = vmul.f32 %v798_v0, %v1185_v31  ;;  %v1270_v14 = vmul.f32 %v1157_v7, %v242_v1  ;;  %v244_v49 = vld [vmem:[%s1137_s4 + $0x65] sm:$0xff]  ;;  %v786_v53 = vld [vmem:[%s1137_s4 + $0x15d] sm:$0xff] }
  0x43   : > { %v881_v60 = vpop.eup %880  ;;  %888 = vrcp.f32 %v1233_v54  ;;  %v463_v61 = vand.u32 2147483648, %v1233_v54  ;;  %v461_v3 = vand.u32 2147483647, %v1233_v54  ;;  %vm457_vm0 = vweird.f32 %v1233_v54  ;;  %v787_v0 = vld [vmem:[%s1137_s4 + $0x165] sm:$0xff] }
  0x44   : > { %v883_v2 = vpop.eup %882  ;;  %890 = vrcp.f32 %v1237_v57  ;;  %v477_v4 = vand.u32 2147483648, %v1237_v57  ;;  %v475_v8 = vand.u32 2147483647, %v1237_v57  ;;  %v1257_v9 = vadd.f32 1.0, %v881_v60 }
  0x45   : > { %v1259_v10 = vadd.f32 1.0, %v883_v2  ;;  %vm471_vm1 = vweird.f32 %v1237_v57  ;;  %v1272_v15 = vor.u32 1.1754944e-38, %v463_v61  ;;  %vm1278_vm2 = vcmp.eq.f32.partialorder %v461_v3, 8.507059e+37 }
  0x46   : > { %v885_v12 = vpop.eup %884  ;;  %v1274_v16 = vor.u32 1.1754944e-38, %v477_v4  ;;  %892 = vrcp.f32 %v1257_v9  ;;  %v491_v18 = vand.u32 2147483648, %v1257_v9  ;;  %v489_v21 = vand.u32 2147483647, %v1257_v9 }
  0x47   : > { %894 = vrcp.f32 %v1259_v10  ;;  %v505_v23 = vand.u32 2147483648, %v1259_v10  ;;  %v425_v24 = vmul.f32 1.442695, %v406_v62  ;;  %vm1290_vm3 = vcmp.eq.f32.partialorder %v475_v8, 8.507059e+37 }
  0x48   : > { %v887_v19 = vpop.eup %886  ;;  %v503_v28 = vand.u32 2147483647, %v1259_v10  ;;  %v1295_v29 = vadd.f32 1.0, %v885_v12  ;;  %v352_v32 = vadd.f32 %v339_v55, %v310_v5  ;;  %vm485_vm4 = vweird.f32 %v1257_v9 }
  0x49   : > { %v889_v26 = vpop.eup %888  ;;  %v1297_v30 = vadd.f32 1.0, %v887_v19  ;;  %v1301_v35 = vor.u32 1.1754944e-38, %v491_v18  ;;  %vm499_vm5 = vweird.f32 %v1259_v10  ;;  %v1305_v36 = vor.u32 1.1754944e-38, %v505_v23 }
  0x4a   : > { %v891_v33 = vpop.eup %890  ;;  %v453_v34 = vmul.f32 %v889_v26, %v1233_v54  ;;  %vm458_vm6 = vweird.f32 %v889_v26  ;;  %896 = vrcp.f32 %v1295_v29  ;;  %vm1308_vm7 = vcmp.eq.f32.partialorder %v489_v21, 8.507059e+37  ;;  %v771_v21 = vld [vmem:[%s1137_s4 + $0xd5] sm:$0xff] }
  0x4b   : > { %v467_v22 = vmul.f32 %v891_v33, %v1237_v57  ;;  %v517_v39 = vand.u32 2147483647, %v1295_v29  ;;  %v519_v40 = vand.u32 2147483648, %v1295_v29  ;;  %898 = vrcp.f32 %v1297_v30  ;;  %vm1328_vm12 = vmor %vm457_vm0, %vm458_vm6 }
  0x4c   : > { %v454_v37 = vsub.f32 1.0, %v453_v34  ;;  %v893_v41 = vpop.eup %892  ;;  %vm472_vm8 = vweird.f32 %v891_v33  ;;  %vm1316_vm9 = vcmp.eq.f32.partialorder %v503_v28, 8.507059e+37  ;;  %v531_v44 = vand.u32 2147483647, %v1297_v30  ;;  %v785_v34 = vld [vmem:[%s1137_s4 + $0x155] sm:$0xff] }
  0x4d   : > { %v468_v42 = vsub.f32 1.0, %v467_v22  ;;  %v533_v45 = vand.u32 2147483648, %v1297_v30  ;;  %v895_v46 = vpop.eup %894  ;;  %v481_v48 = vmul.f32 %v893_v41, %v1257_v9  ;;  %vm513_vm10 = vweird.f32 %v1295_v29  ;;  %vm1336_vm15 = vmor %vm471_vm1, %vm472_vm8 }
  0x4e   : > { %v455_v47 = vmul.f32 %v889_v26, %v454_v37  ;;  %vm486_vm13 = vweird.f32 %v893_v41  ;;  %v495_v51 = vmul.f32 %v895_v46, %v1259_v10  ;;  %vm500_vm14 = vweird.f32 %v895_v46 }
  0x4f   : > { %v469_v50 = vmul.f32 %v891_v33, %v468_v42  ;;  %v482_v55 = vsub.f32 1.0, %v481_v48  ;;  %vm1340_vm11 = vcmp.eq.f32.partialorder %v517_v39, 8.507059e+37  ;;  %v520_v56 = vor.u32 1.1754944e-38, %v519_v40  ;;  %vm1367_vm6 = vmor %vm485_vm4, %vm486_vm13 }
  0x50   : > { %v456_v52 = vadd.f32 %v889_v26, %v455_v47  ;;  %v1344_v60 = vor.u32 1.1754944e-38, %v533_v45  ;;  %v897_v61 = vpop.eup %896  ;;  %v496_v62 = vsub.f32 1.0, %v495_v51  ;;  %vm1351_vm0 = vcmp.eq.f32.partialorder %v531_v44, 8.507059e+37  ;;  %v243_v45 = vld [vmem:[%s1137_s4 + $0x5d] sm:$0xff] }
  0x51   : > { %v470_v57 = vadd.f32 %v891_v33, %v469_v50  ;;  %900 = vpow2.f32 %v425_v24  ;;  %v394_v1 = vadd.f32 %v1240_v58, %v352_v32  ;;  %v899_v2 = vpop.eup %898  ;;  %v483_v4 = vmul.f32 %v893_v41, %v482_v55  ;;  %v773_v55 = vld [vmem:[%s1137_s4 + $0xe5] sm:$0xff] }
  0x52   : > { %v460_v3 = vsel %vm1328_vm12, %v889_v26, %v456_v52  ;;  %v509_v5 = vmul.f32 %v897_v61, %v1295_v29  ;;  %vm514_vm1 = vweird.f32 %v897_v61  ;;  %v497_v18 = vmul.f32 %v895_v46, %v496_v62 }
  0x53   : > { %v465_v8 = vsel %vm1278_vm2, %v1272_v15, %v460_v3  ;;  %v474_v12 = vsel %vm1336_vm15, %v891_v33, %v470_v57  ;;  %v523_v19 = vmul.f32 %v899_v2, %v1297_v30  ;;  %v484_v20 = vadd.f32 %v893_v41, %v483_v4  ;;  %vm1380_vm2 = vmor %vm499_vm5, %vm500_vm14 }
  0x54   : > { %634 = vst [vmem:[%s1349_s6] sm:$0xff] %v465_v8  ;;  %v479_v15 = vsel %vm1290_vm3, %v1274_v16, %v474_v12  ;;  %v510_v23 = vsub.f32 1.0, %v509_v5  ;;  %vm528_vm4 = vweird.f32 %v899_v2  ;;  %v498_v24 = vadd.f32 %v895_v46, %v497_v18  ;;  %vm1401_vm3 = vmor %vm513_vm10, %vm514_vm1  ;;  %v801_v8 = vld [vmem:[%s1137_s4 + $0x1e5] sm:$0xff] }
  0x55   : > { %635 = vst [vmem:[%s1349_s6 + $0x8] sm:$0xff] %v479_v15  ;;  %v524_v26 = vsub.f32 1.0, %v523_v19  ;;  %v407_v28 = vsub.f32 0.0, %v394_v1  ;;  %v311_v32 = vadd.f32 %v1243_v59, %v1262_v11  ;;  %v488_v16 = vsel %vm1367_vm6, %v893_v41, %v484_v20  ;;  %v788_v11 = vld [vmem:[%s1137_s4 + $0x16d] sm:$0x1f] }
  0x56   : > { %v511_v27 = vmul.f32 %v897_v61, %v510_v23  ;;  %v270_v10 = vadd.f32 %v1270_v14, %v1155_v6  ;;  %v299_v33 = vmul.f32 %v771_v21, %v1168_v17  ;;  %v493_v37 = vsel %vm1308_vm7, %v1301_v35, %v488_v16  ;;  %v245_v23 = vld [vmem:[%s1137_s4 + $0x6d] sm:$0x1f] }
  0x57   : > { %v901_v22 = vpop.eup %900  ;;  %v502_v59 = vsel %vm1380_vm2, %v895_v46, %v498_v24  ;;  %v525_v14 = vmul.f32 %v899_v2, %v524_v26  ;;  %v427_v39 = vmul.f32 1.442695, %v407_v28  ;;  %636 = vst [vmem:[%s1349_s6 + $0x10] sm:$0xff] %v493_v37  ;;  %vm1544_vm5 = vweird.f32 %v1297_v30  ;;  %v799_v30 = vld [vmem:[%s1137_s4 + $0x1d5] sm:$0xff]  ;;  %v772_v46 = vld [vmem:[%s1137_s4 + $0xdd] sm:$0xff] }
  0x58   : > { %v507_v35 = vsel %vm1316_vm9, %v1305_v36, %v502_v59  ;;  %v512_v38 = vadd.f32 %v897_v61, %v511_v27  ;;  %vm1412_vm7 = vmor %vm1544_vm5, %vm528_vm4  ;;  %v1416_v29 = vadd.f32 1.0, %v901_v22  ;;  %v353_v41 = vadd.f32 %v1248_v63, %v311_v32  ;;  %v774_v24 = vld [vmem:[%s1137_s4 + $0xed] sm:$0x1f] }
  0x59   : > { %637 = vst [vmem:[%s1349_s6 + $0x18] sm:$0xff] %v507_v35  ;;  %v526_v42 = vadd.f32 %v899_v2, %v525_v14  ;;  %902 = vpow2.f32 %v427_v39  ;;  %v312_v43 = vadd.f32 %v299_v33, %v270_v10  ;;  %v341_v36 = vmul.f32 %v785_v34, %v1177_v25 }
  0x5a   : > { %v516_v44 = vsel %vm1401_vm3, %v897_v61, %v512_v38  ;;  %904 = vrcp.f32 %v1416_v29  ;;  %v395_v48 = vadd.f32 %v1267_v13, %v353_v41  ;;  %v383_v52 = vmul.f32 %v799_v30, %v1185_v31  ;;  %v800_v13 = vld [vmem:[%s1137_s4 + $0x1dd] sm:$0xff]  ;;  %v802_v41 = vld [vmem:[%s1137_s4 + $0x1ed] sm:$0x1f] }
  0x5b   : > { %v521_v63 = vsel %vm1340_vm11, %v520_v56, %v516_v44  ;;  %v530_v47 = vsel %vm1412_vm7, %v899_v2, %v526_v42  ;;  %v354_v51 = vadd.f32 %v341_v36, %v312_v43  ;;  %v258_v56 = vmul.f32 %v1157_v7, %v243_v45 }
  0x5c   : > { %638 = vst [vmem:[%s1349_s6 + $0x20] sm:$0xff] %v521_v63  ;;  %v535_v50 = vsel %vm1351_vm0, %v1344_v60, %v530_v47  ;;  %v408_v54 = vsub.f32 0.0, %v395_v48  ;;  %v300_v61 = vmul.f32 %v772_v46, %v1168_v17  ;;  %vm541_vm8 = vweird.f32 %v1416_v29 }
  0x5d   : > { %639 = vst [vmem:[%s1349_s6 + $0x28] sm:$0xff] %v535_v50  ;;  %v545_v57 = vand.u32 2147483647, %v1416_v29  ;;  %v396_v62 = vadd.f32 %v383_v52, %v354_v51  ;;  %v259_v60 = vmul.f32 %v1157_v7, %v244_v49  ;;  %v271_v3 = vadd.f32 %v258_v56, %v1155_v6 }
  0x5e   : > { %v429_v2 = vmul.f32 1.442695, %v408_v54  ;;  %v342_v4 = vmul.f32 %v786_v53, %v1177_v25  ;;  %v301_v5 = vmul.f32 %v773_v55, %v1168_v17  ;;  %v384_v19 = vmul.f32 %v800_v13, %v1185_v31 }
  0x5f   : > { %v903_v1 = vpop.eup %902  ;;  %v409_v18 = vsub.f32 0.0, %v396_v62  ;;  %v272_v21 = vadd.f32 %v259_v60, %v1155_v6  ;;  %v313_v20 = vadd.f32 %v300_v61, %v271_v3  ;;  %v343_v9 = vmul.f32 %v787_v0, %v1177_v25 }
  0x60   : > { %v905_v12 = vpop.eup %904  ;;  %v446_v58 = vadd.f32 1.0, %v903_v1  ;;  %906 = vpow2.f32 %v429_v2  ;;  %v547_v26 = vand.u32 2147483648, %v1416_v29  ;;  %v385_v28 = vmul.f32 %v801_v8, %v1185_v31 }
  0x61   : > { %v537_v15 = vmul.f32 %v905_v12, %v1416_v29  ;;  %vm542_vm9 = vweird.f32 %v905_v12  ;;  %v431_v16 = vmul.f32 1.442695, %v409_v18  ;;  %v355_v27 = vadd.f32 %v342_v4, %v313_v20 }
  0x62   : > { %908 = vrcp.f32 %v446_v58  ;;  %v314_v10 = vadd.f32 %v301_v5, %v272_v21  ;;  %v260_v33 = vmul.f32 %v1157_v7, %v245_v23  ;;  %v302_v34 = vmul.f32 %v774_v24, %v1168_v17  ;;  %vm1466_vm10 = vmor %vm541_vm8, %vm542_vm9 }
  0x63   : > { %v538_v32 = vsub.f32 1.0, %v537_v15  ;;  %910 = vpow2.f32 %v431_v16  ;;  %v397_v37 = vadd.f32 %v384_v19, %v355_v27  ;;  %v548_v39 = vor.u32 1.1754944e-38, %v547_v26 }
  0x64   : > { %v356_v59 = vadd.f32 %v343_v9, %v314_v10  ;;  %v273_v35 = vadd.f32 %v260_v33, %v1155_v6  ;;  %vm546_vm11 = vcmp.eq.f32.partialorder %v545_v57, 8.507059e+37  ;;  %vm555_vm12 = vweird.f32 %v446_v58 }
  0x65   : > { %v539_v22 = vmul.f32 %v905_v12, %v538_v32  ;;  %v410_v7 = vsub.f32 0.0, %v397_v37  ;;  %v344_v29 = vmul.f32 %v788_v11, %v1177_v25  ;;  %v559_v45 = vand.u32 2147483647, %v446_v58 }
  0x66   : > { %v907_v38 = vpop.eup %906  ;;  %v398_v17 = vadd.f32 %v385_v28, %v356_v59  ;;  %v315_v36 = vadd.f32 %v302_v34, %v273_v35  ;;  %v561_v63 = vand.u32 2147483648, %v446_v58  ;;  %v386_v47 = vmul.f32 %v802_v41, %v1185_v31 }
  0x67   : > { %v540_v40 = vadd.f32 %v905_v12, %v539_v22  ;;  %v447_v43 = vadd.f32 1.0, %v907_v38  ;;  %v433_v46 = vmul.f32 1.442695, %v410_v7  ;;  %vm560_vm15 = vcmp.eq.f32.partialorder %v559_v45, 8.507059e+37 }
  0x68   : > { %v909_v42 = vpop.eup %908  ;;  %v411_v50 = vsub.f32 0.0, %v398_v17  ;;  %v357_v52 = vadd.f32 %v344_v29, %v315_v36  ;;  %v562_v55 = vor.u32 1.1754944e-38, %v561_v63 }
  0x69   : > { %v544_v30 = vsel %vm1466_vm10, %v905_v12, %v540_v40  ;;  %v551_v44 = vmul.f32 %v909_v42, %v446_v58  ;;  %912 = vrcp.f32 %v447_v43  ;;  %v911_v48 = vpop.eup %910  ;;  %vm556_vm13 = vweird.f32 %v909_v42 }
  0x6a   : > { %v549_v6 = vsel %vm546_vm11, %v548_v39, %v544_v30  ;;  %914 = vpow2.f32 %v433_v46  ;;  %v448_v51 = vadd.f32 1.0, %v911_v48  ;;  %v435_v53 = vmul.f32 1.442695, %v411_v50  ;;  %vm557_vm14 = vmor %vm555_vm12, %vm556_vm13 }
  0x6b   : > { %640 = vst [vmem:[%s1349_s6 + $0x30] sm:$0xff] %v549_v6  ;;  %v552_v49 = vsub.f32 1.0, %v551_v44  ;;  %v399_v56 = vadd.f32 %v386_v47, %v357_v52  ;;  %v573_v62 = vand.u32 2147483647, %v447_v43  ;;  %v575_v1 = vand.u32 2147483648, %v447_v43 }
  0x6c   : > { %916 = vrcp.f32 %v448_v51  ;;  %vm569_vm0 = vweird.f32 %v447_v43  ;;  %vm583_vm4 = vweird.f32 %v448_v51  ;;  %v589_v21 = vand.u32 2147483648, %v448_v51 }
  0x6d   : > { %v553_v25 = vmul.f32 %v909_v42, %v552_v49  ;;  %918 = vpow2.f32 %v435_v53  ;;  %v412_v60 = vsub.f32 0.0, %v399_v56  ;;  %vm1479_vm6 = vcmp.eq.f32.partialorder %v573_v62, 8.507059e+37 }
  0x6e   : > { %v576_v19 = vor.u32 1.1754944e-38, %v575_v1  ;;  %v587_v23 = vand.u32 2147483647, %v448_v51  ;;  %v590_v27 = vor.u32 1.1754944e-38, %v589_v21 }
  0x6f   : > { %v554_v54 = vadd.f32 %v909_v42, %v553_v25  ;;  %v913_v31 = vpop.eup %912  ;;  %v437_v4 = vmul.f32 1.442695, %v412_v60 }
  0x70   : > { %v915_v61 = vpop.eup %914  ;;  %v565_v57 = vmul.f32 %v913_v31, %v447_v43  ;;  %vm570_vm1 = vweird.f32 %v913_v31  ;;  %vm588_vm7 = vcmp.eq.f32.partialorder %v587_v23, 8.507059e+37 }
  0x71   : > { %v558_v13 = vsel %vm557_vm14, %v909_v42, %v554_v54  ;;  %v449_v2 = vadd.f32 1.0, %v915_v61  ;;  %vm571_vm2 = vmor %vm569_vm0, %vm570_vm1 }
  0x72   : > { %v563_v0 = vsel %vm560_vm15, %v562_v55, %v558_v13  ;;  %v566_v3 = vsub.f32 1.0, %v565_v57  ;;  %v917_v5 = vpop.eup %916 }
  0x73   : > { %641 = vst [vmem:[%s1349_s6 + $0x38] sm:$0xff] %v563_v0  ;;  %920 = vrcp.f32 %v449_v2  ;;  %v919_v8 = vpop.eup %918  ;;  %v579_v18 = vmul.f32 %v917_v5, %v448_v51  ;;  %vm584_vm3 = vweird.f32 %v917_v5  ;;  %v601_v22 = vand.u32 2147483647, %v449_v2 }
  0x74   : > { %v567_v12 = vmul.f32 %v913_v31, %v566_v3  ;;  %922 = vpow2.f32 %v437_v4  ;;  %v450_v15 = vadd.f32 1.0, %v919_v8  ;;  %vm1485_vm5 = vmor %vm583_vm4, %vm584_vm3  ;;  %v603_v37 = vand.u32 2147483648, %v449_v2 }
  0x75   : > { %v580_v9 = vsub.f32 1.0, %v579_v18  ;;  %vm597_vm8 = vweird.f32 %v449_v2  ;;  %vm602_vm11 = vcmp.eq.f32.partialorder %v601_v22, 8.507059e+37 }
  0x76   : > { %v568_v20 = vadd.f32 %v913_v31, %v567_v12  ;;  %924 = vrcp.f32 %v450_v15  ;;  %v604_v7 = vor.u32 1.1754944e-38, %v603_v37  ;;  %vm611_vm12 = vweird.f32 %v450_v15 }
  0x77   : > { %v581_v26 = vmul.f32 %v917_v5, %v580_v9  ;;  %v617_v17 = vand.u32 2147483648, %v450_v15  ;;  %v615_v43 = vand.u32 2147483647, %v450_v15 }
  0x78   : > { %v572_v24 = vsel %vm571_vm2, %v913_v31, %v568_v20 }
  0x79   : > { %v921_v28 = vpop.eup %920  ;;  %v577_v32 = vsel %vm1479_vm6, %v576_v19, %v572_v24  ;;  %v582_v33 = vadd.f32 %v917_v5, %v581_v26  ;;  %v618_v45 = vor.u32 1.1754944e-38, %v617_v17  ;;  %vm616_vm15 = vcmp.eq.f32.partialorder %v615_v43, 8.507059e+37 }
  0x7a   : > { %v923_v10 = vpop.eup %922  ;;  %642 = vst [vmem:[%s1349_s6 + $0x40] sm:$0xff] %v577_v32  ;;  %v593_v34 = vmul.f32 %v921_v28, %v449_v2  ;;  %vm598_vm9 = vweird.f32 %v921_v28 }
  0x7b   : > { %v451_v59 = vadd.f32 1.0, %v923_v10  ;;  %v586_v11 = vsel %vm1485_vm5, %v917_v5, %v582_v33  ;;  %vm599_vm10 = vmor %vm597_vm8, %vm598_vm9 }
  0x7c   : > { %v594_v14 = vsub.f32 1.0, %v593_v34  ;;  %v925_v39 = vpop.eup %924  ;;  %v591_v35 = vsel %vm588_vm7, %v590_v27, %v586_v11 }
  0x7d   : > { %926 = vrcp.f32 %v451_v59  ;;  %643 = vst [vmem:[%s1349_s6 + $0x48] sm:$0xff] %v591_v35  ;;  %v607_v40 = vmul.f32 %v925_v39, %v450_v15  ;;  %vm612_vm13 = vweird.f32 %v925_v39  ;;  %vm625_vm0 = vweird.f32 %v451_v59 }
  0x7e   : > { %v595_v38 = vmul.f32 %v921_v28, %v594_v14  ;;  %vm613_vm14 = vmor %vm611_vm12, %vm612_vm13  ;;  %v631_v63 = vand.u32 2147483648, %v451_v59  ;;  %v629_v49 = vand.u32 2147483647, %v451_v59 }
  0x7f   : > { %v608_v42 = vsub.f32 1.0, %v607_v40 }
  0x80   : > { %v596_v41 = vadd.f32 %v921_v28, %v595_v38  ;;  %v632_v52 = vor.u32 1.1754944e-38, %v631_v63  ;;  %vm630_vm2 = vcmp.eq.f32.partialorder %v629_v49, 8.507059e+37 }
  0x81   : > { %v609_v29 = vmul.f32 %v925_v39, %v608_v42 }
  0x82   : > { %v600_v36 = vsel %vm599_vm10, %v921_v28, %v596_v41 }
  0x83   : > { %v927_v30 = vpop.eup %926  ;;  %v605_v44 = vsel %vm602_vm11, %v604_v7, %v600_v36  ;;  %v610_v46 = vadd.f32 %v925_v39, %v609_v29 }
  0x84   : > { %644 = vst [vmem:[%s1349_s6 + $0x50] sm:$0xff] %v605_v44  ;;  %v621_v6 = vmul.f32 %v927_v30, %v451_v59  ;;  %vm626_vm1 = vweird.f32 %v927_v30 }
  0x85   : > { %v614_v47 = vsel %vm613_vm14, %v925_v39, %v610_v46  ;;  %vm627_vm6 = vmor %vm625_vm0, %vm626_vm1 }
  0x86   : > { %v622_v48 = vsub.f32 1.0, %v621_v6  ;;  %v619_v50 = vsel %vm616_vm15, %v618_v45, %v614_v47 }
  0x87   : > { %645 = vst [vmem:[%s1349_s6 + $0x58] sm:$0xff] %v619_v50 }
  0x88   : > { %v623_v51 = vmul.f32 %v927_v30, %v622_v48 }
  0x8a   : > { %v624_v25 = vadd.f32 %v927_v30, %v623_v51 }
  0x8c   : > { %v628_v53 = vsel %vm627_vm6, %v927_v30, %v624_v25 }
  0x8d   : > { %v633_v55 = vsel %vm630_vm2, %v632_v52, %v628_v53 }
  0x8e   : > { %646 = vst [vmem:[%s1349_s6 + $0x60] sm:$0x1f] %v633_v55 }
  0x8f PF: > { %s18_s19 = sadd.s32 1, %s1027_s19   ;;  %s1553_s14 = smov %s1011_s15 }
  0x90   : > { %p15_p2 = scmp.ge.s32.totalorder %s18_s19, 4   ;;  %s1554_s15 = smov %s1015_s16 }
  0x91   : > { %s1555_s16 = smov %s1130_s13  ;;  %s1556_s17 = smov %s1023_s18 }
  0x92   : > { %s1557_s18 = smov %s1559_s30  ;;  %17 = sbr.rel (!%p15_p2) target bundleno = 7 (0x7), region = 80 }
  0x97   :  { %674 = vsyncpa [#allocation4], 1 }
  0x98   :  { %676 = vsyncpa [#allocation4 + $0x1], 1 }
  0x99   :  { %677 = vsyncpa [#allocation5], 1 }
  0x9a   :  { %679 = vsyncpa [#allocation5 + $0x1], 1 }

</bundles_post_ra>
